<compile_context>
chip_gen: v7x
topology: tpu7x:2x2x1
jax: 0.10.0
libtpu: 0.0.40
codegen_flags: <defaults>
</compile_context>

<pallas_src>
import jax
import jax.numpy as jnp
from jax.experimental import pallas as pl
from jax.experimental.pallas import tpu as pltpu

_IN = 4        # state_size, streamed unpadded
_HIDDEN = 128  # padded width of the hidden layers (MXU lane width)
_OUT_PAD = 8   # action_size (2) padded to 8 output lanes


def _round_up(n, m):
    return ((n + m - 1) // m) * m


def _dqn_kernel(x_ref, w_ref, b_ref, o_ref):
    # x_ref: (tb, 4) bf16 | w_ref: (3, 128, 128) bf16
    # b_ref: (3, 1, 128) f32 | o_ref: (tb, 8) f32
    x = x_ref[...]

    # fc1: (tb,4) @ (4,128) -> f32 accumulate, + bias, ReLU.
    # Rows >= 4 of w_ref[0] are zero padding; slice them off so the
    # contraction stays K=4 (one MXU pass either way).
    w1 = w_ref[0][:_IN, :]
    h = jnp.dot(x, w1, preferred_element_type=jnp.float32) + b_ref[0]
    h = jnp.maximum(h, 0.0).astype(jnp.bfloat16)

    # fc2: (tb,128) @ (128,128)
    h = jnp.dot(h, w_ref[1], preferred_element_type=jnp.float32) + b_ref[1]
    h = jnp.maximum(h, 0.0).astype(jnp.bfloat16)

    # fc3: compute the full 128 lanes (padded cols are exactly zero), then
    # store only the first _OUT_PAD lanes so HBM writeback stays narrow.
    q = jnp.dot(h, w_ref[2], preferred_element_type=jnp.float32) + b_ref[2]
    o_ref[...] = q[:, :_OUT_PAD]


def init_params(key, state_size=4, action_size=2):
    """Deterministic synthetic init matching the nn.Module layer shapes.

    PyTorch stores Linear weight as [out, in]; we store the transpose [in, out].
    """
    ks = jax.random.split(key, 6)

    def lin(kw, kb, fan_in, fan_out):
        bound = 1.0 / jnp.sqrt(fan_in)  # mimic torch Linear default init range
        w = jax.random.uniform(kw, (fan_in, fan_out), jnp.float32, -bound, bound)
        b = jax.random.uniform(kb, (1, fan_out), jnp.float32, -bound, bound)
        return w, b

    w1, b1 = lin(ks[0], ks[1], state_size, 32)
    w2, b2 = lin(ks[2], ks[3], 32, 64)
    w3, b3 = lin(ks[4], ks[5], 64, action_size)
    return {"w1": w1, "b1": b1, "w2": w2, "b2": b2, "w3": w3, "b3": b3}


def pack_params(params, width=_HIDDEN):
    """Zero-pad each layer to [width,width] / [1,width] and stack (done once).

    Weights are cast to bf16 (VMEM-resident, full-rate MXU); biases stay f32
    since the bias add / ReLU are done in f32.
    """
    def pad_w(w):
        fi, fo = w.shape
        return jnp.pad(w, ((0, width - fi), (0, width - fo)))

    def pad_b(b):
        b = b.reshape(1, -1)
        return jnp.pad(b, ((0, 0), (0, width - b.shape[-1])))

    w_stack = jnp.stack(
        [pad_w(params["w1"]), pad_w(params["w2"]), pad_w(params["w3"])]
    ).astype(jnp.bfloat16)
    b_stack = jnp.stack(
        [pad_b(params["b1"]), pad_b(params["b2"]), pad_b(params["b3"])]
    ).astype(jnp.float32)
    return w_stack, b_stack


def dqn_forward(x, w_stack, b_stack, action_size, *, tb=None):
    """x: [B, 4] f32; w_stack: [3,128,128] bf16; b_stack: [3,1,128] f32."""
    B, S = x.shape
    assert S == _IN, f"expected state_size={_IN}, got {S}"

    # Batch tile selection:
    #   * small batches: one tile (latency-bound anyway)
    #   * mid-size: two equal tiles so both v7x TensorCores get work
    #   * huge: 2048-row tiles (amortizes step overhead, fits v5e scoped VMEM)
    if tb is None:
        if B <= 256:
            tb = _round_up(B, 16)
        elif B <= 4096:
            tb = _round_up(pl.cdiv(B, 2), 16)
        else:
            tb = 2048
    tb = _round_up(tb, 16)
    n_tiles = pl.cdiv(B, tb)
    Bp = n_tiles * tb

    # Cast streamed input to bf16; pad only the batch (never the 4-wide
    # feature dim — it stays at its natural width in HBM).
    xb = x.astype(jnp.bfloat16)
    if Bp != B:
        xb = jnp.pad(xb, ((0, Bp - B), (0, 0)))

    out = pl.pallas_call(
        _dqn_kernel,
        out_shape=jax.ShapeDtypeStruct((Bp, _OUT_PAD), jnp.float32),
        grid=(n_tiles,),
        in_specs=[
            pl.BlockSpec((tb, _IN), lambda i: (i, 0)),               # x: streamed
            pl.BlockSpec((3, _HIDDEN, _HIDDEN), lambda i: (0, 0, 0)),  # W: resident
            pl.BlockSpec((3, 1, _HIDDEN), lambda i: (0, 0, 0)),        # b: resident
        ],
        out_specs=pl.BlockSpec((tb, _OUT_PAD), lambda i: (i, 0)),
        compiler_params=pltpu.CompilerParams(
            dimension_semantics=("parallel",),  # 2x on v7x megacore when >=2 tiles
        ),
    )(xb, w_stack, b_stack)

    return out[:B, :action_size]


def _reference_f32(x, p):
    h1 = jnp.maximum(x @ p["w1"] + p["b1"], 0.0)
    h2 = jnp.maximum(h1 @ p["w2"] + p["b2"], 0.0)
    return h2 @ p["w3"] + p["b3"]


def _reference_packed(x, w_stack, b_stack, action_size):
    """Mirrors the kernel's bf16-operand / f32-accumulate math exactly."""
    xb = x.astype(jnp.bfloat16)
    h = jnp.dot(xb, w_stack[0, :_IN, :], preferred_element_type=jnp.float32) + b_stack[0]
    h = jnp.maximum(h, 0.0).astype(jnp.bfloat16)
    h = jnp.dot(h, w_stack[1], preferred_element_type=jnp.float32) + b_stack[1]
    h = jnp.maximum(h, 0.0).astype(jnp.bfloat16)
    q = jnp.dot(h, w_stack[2], preferred_element_type=jnp.float32) + b_stack[2]
    return q[:, :action_size]


if __name__ == "__main__":
    key = jax.random.PRNGKey(0)
    k_params, k_x1, k_x2 = jax.random.split(key, 3)

    state_size, action_size = 4, 2
    params = init_params(k_params, state_size=state_size, action_size=action_size)
    w_stack, b_stack = pack_params(params)

    # Small demo batch (single grid step).
    batch = 8
    x = jax.random.normal(k_x1, (batch, state_size), dtype=jnp.float32)
    out = jax.block_until_ready(dqn_forward(x, w_stack, b_stack, action_size))
    assert out.shape == (batch, action_size)
    ref_p = _reference_packed(x, w_stack, b_stack, action_size)
    ref_f = _reference_f32(x, params)
    assert jnp.allclose(out, ref_p, atol=5e-3, rtol=5e-3), "mismatch vs packed bf16 reference (B=8)"
    assert jnp.allclose(out, ref_f, atol=1.5e-1, rtol=1e-1), "mismatch vs f32 reference (B=8)"

    # Larger, non-multiple batch: exercises the 2-tile grid + batch padding.
    batch2 = 1040
    x2 = jax.random.normal(k_x2, (batch2, state_size), dtype=jnp.float32)
    out2 = jax.block_until_ready(dqn_forward(x2, w_stack, b_stack, action_size))
    assert out2.shape == (batch2, action_size)
    ref_p2 = _reference_packed(x2, w_stack, b_stack, action_size)
    ref_f2 = _reference_f32(x2, params)
    assert jnp.allclose(out2, ref_p2, atol=5e-3, rtol=5e-3), "mismatch vs packed bf16 reference (B=1040)"
    assert jnp.allclose(out2, ref_f2, atol=1.5e-1, rtol=1e-1), "mismatch vs f32 reference (B=1040)"

    print("KERNEL_OK")
</pallas_src>

<mosaic_0001>
module attributes {stable_mosaic.version = 11 : i64} {
  func.func @_dqn_kernel(%arg0: i32, %arg1: memref<16x4xbf16, #tpu.memory_space<vmem>>, %arg2: memref<3x128x128xbf16, #tpu.memory_space<vmem>>, %arg3: memref<3x1x128xf32, #tpu.memory_space<vmem>>, %arg4: memref<16x8xf32, #tpu.memory_space<vmem>>) attributes {dimension_semantics = [#tpu.dimension_semantics<parallel>], iteration_bounds = array<i64: 1>, scalar_prefetch = 0 : i64, scratch_operands = 0 : i64, tpu.core_type = #tpu.core_type<tc>, window_params = [{transform_indices = @transform_0, window_bounds = array<i64: 16, 4>}, {pipeline_mode = #tpu.pipeline_mode<synchronous>, transform_indices = @transform_1, window_bounds = array<i64: 3, 128, 128>}, {pipeline_mode = #tpu.pipeline_mode<synchronous>, transform_indices = @transform_2, window_bounds = array<i64: 3, 1, 128>}, {transform_indices = @transform_3, window_bounds = array<i64: 16, 8>}]} {
    %c0 = arith.constant 0 : index
    %c0_0 = arith.constant 0 : index
    %0 = vector.load %arg1[%c0, %c0_0] : memref<16x4xbf16, #tpu.memory_space<vmem>>, vector<16x4xbf16>
    %c0_1 = arith.constant 0 : index
    %c0_2 = arith.constant 0 : index
    %c0_3 = arith.constant 0 : index
    %1 = vector.load %arg2[%c0_1, %c0_2, %c0_3] : memref<3x128x128xbf16, #tpu.memory_space<vmem>>, vector<1x128x128xbf16>
    %2 = vector.shape_cast %1 : vector<1x128x128xbf16> to vector<128x128xbf16>
    %3 = vector.extract_strided_slice %2 {offsets = [0, 0], sizes = [4, 128], strides = [1, 1]} : vector<128x128xbf16> to vector<4x128xbf16>
    %cst = arith.constant dense<0.000000e+00> : vector<16x128xf32>
    %4 = tpu.matmul %0, %3, %cst {dimension_numbers = #tpu.dot_dimension_numbers<[1], [0], [0], [1], [0, 0, 1, 1], [], []>} : vector<16x4xbf16>, vector<4x128xbf16>, vector<16x128xf32> -> vector<16x128xf32>
    %c0_4 = arith.constant 0 : index
    %c0_5 = arith.constant 0 : index
    %c0_6 = arith.constant 0 : index
    %5 = vector.load %arg3[%c0_4, %c0_5, %c0_6] : memref<3x1x128xf32, #tpu.memory_space<vmem>>, vector<1x1x128xf32>
    %6 = vector.shape_cast %5 : vector<1x1x128xf32> to vector<1x128xf32>
    %7 = vector.broadcast %6 : vector<1x128xf32> to vector<16x128xf32>
    %8 = arith.addf %4, %7 : vector<16x128xf32>
    %cst_7 = arith.constant 0.000000e+00 : f32
    %9 = vector.broadcast %cst_7 : f32 to vector<16x128xf32>
    %10 = arith.maximumf %8, %9 : vector<16x128xf32>
    %11 = arith.truncf %10 : vector<16x128xf32> to vector<16x128xbf16>
    %c1 = arith.constant 1 : index
    %c0_8 = arith.constant 0 : index
    %c0_9 = arith.constant 0 : index
    %12 = vector.load %arg2[%c1, %c0_8, %c0_9] : memref<3x128x128xbf16, #tpu.memory_space<vmem>>, vector<1x128x128xbf16>
    %13 = vector.shape_cast %12 : vector<1x128x128xbf16> to vector<128x128xbf16>
    %cst_10 = arith.constant dense<0.000000e+00> : vector<16x128xf32>
    %14 = tpu.matmul %11, %13, %cst_10 {dimension_numbers = #tpu.dot_dimension_numbers<[1], [0], [0], [1], [0, 0, 1, 1], [], []>} : vector<16x128xbf16>, vector<128x128xbf16>, vector<16x128xf32> -> vector<16x128xf32>
    %c1_11 = arith.constant 1 : index
    %c0_12 = arith.constant 0 : index
    %c0_13 = arith.constant 0 : index
    %15 = vector.load %arg3[%c1_11, %c0_12, %c0_13] : memref<3x1x128xf32, #tpu.memory_space<vmem>>, vector<1x1x128xf32>
    %16 = vector.shape_cast %15 : vector<1x1x128xf32> to vector<1x128xf32>
    %17 = vector.broadcast %16 : vector<1x128xf32> to vector<16x128xf32>
    %18 = arith.addf %14, %17 : vector<16x128xf32>
    %cst_14 = arith.constant 0.000000e+00 : f32
    %19 = vector.broadcast %cst_14 : f32 to vector<16x128xf32>
    %20 = arith.maximumf %18, %19 : vector<16x128xf32>
    %21 = arith.truncf %20 : vector<16x128xf32> to vector<16x128xbf16>
    %c2 = arith.constant 2 : index
    %c0_15 = arith.constant 0 : index
    %c0_16 = arith.constant 0 : index
    %22 = vector.load %arg2[%c2, %c0_15, %c0_16] : memref<3x128x128xbf16, #tpu.memory_space<vmem>>, vector<1x128x128xbf16>
    %23 = vector.shape_cast %22 : vector<1x128x128xbf16> to vector<128x128xbf16>
    %cst_17 = arith.constant dense<0.000000e+00> : vector<16x128xf32>
    %24 = tpu.matmul %21, %23, %cst_17 {dimension_numbers = #tpu.dot_dimension_numbers<[1], [0], [0], [1], [0, 0, 1, 1], [], []>} : vector<16x128xbf16>, vector<128x128xbf16>, vector<16x128xf32> -> vector<16x128xf32>
    %c2_18 = arith.constant 2 : index
    %c0_19 = arith.constant 0 : index
    %c0_20 = arith.constant 0 : index
    %25 = vector.load %arg3[%c2_18, %c0_19, %c0_20] : memref<3x1x128xf32, #tpu.memory_space<vmem>>, vector<1x1x128xf32>
    %26 = vector.shape_cast %25 : vector<1x1x128xf32> to vector<1x128xf32>
    %27 = vector.broadcast %26 : vector<1x128xf32> to vector<16x128xf32>
    %28 = arith.addf %24, %27 : vector<16x128xf32>
    %29 = vector.extract_strided_slice %28 {offsets = [0, 0], sizes = [16, 8], strides = [1, 1]} : vector<16x128xf32> to vector<16x8xf32>
    %c0_21 = arith.constant 0 : index
    %c0_22 = arith.constant 0 : index
    %30 = vector.load %arg4[%c0_21, %c0_22] : memref<16x8xf32, #tpu.memory_space<vmem>>, vector<16x8xf32>
    tpu.vector_store %arg4[%c0_21, %c0_22], %29 {strides = array<i32>} : memref<16x8xf32, #tpu.memory_space<vmem>>, vector<16x8xf32>,
    return
  }
  func.func @transform_0(%arg0: i32) -> (i32, i32) {
    %c0_i32 = arith.constant 0 : i32
    %c0_i32_0 = arith.constant 0 : i32
    return %arg0, %c0_i32 : i32, i32
  }
  func.func @transform_1(%arg0: i32) -> (i32, i32, i32) {
    %c0_i32 = arith.constant 0 : i32
    %c0_i32_0 = arith.constant 0 : i32
    %c0_i32_1 = arith.constant 0 : i32
    %c0_i32_2 = arith.constant 0 : i32
    return %c0_i32, %c0_i32_0, %c0_i32_1 : i32, i32, i32
  }
  func.func @transform_2(%arg0: i32) -> (i32, i32, i32) {
    %c0_i32 = arith.constant 0 : i32
    %c0_i32_0 = arith.constant 0 : i32
    %c0_i32_1 = arith.constant 0 : i32
    %c0_i32_2 = arith.constant 0 : i32
    return %c0_i32, %c0_i32_0, %c0_i32_1 : i32, i32, i32
  }
  func.func @transform_3(%arg0: i32) -> (i32, i32) {
    %c0_i32 = arith.constant 0 : i32
    %c0_i32_0 = arith.constant 0 : i32
    return %arg0, %c0_i32 : i32, i32
  }
}

</mosaic_0001>

<bundles_post_ra>
// kernel: tpu_custom_call.1
= control target key start
LH: loop header
LB: loop body
LE: loop exit
PB: predicated region body
PF: predicated region fallthrough
CT: control target
= control target key end

     0   :  { %8 = vsyncpa [#allocation3], 0  ;;  %s470_s12 = smov [#allocation2]   ;;  %s548_s0 = inlined_call_operand.vmem [shape: bf16[16,4], index: 0, kind: input, shape index: {}]   ;;  %s549_s1 = inlined_call_operand.hbm [shape: bf16[3,128,128], index: 1, kind: input, shape index: {}]   ;;  %s550_s2 = inlined_call_operand.vmem [shape: f32[3,1,128], index: 2, kind: input, shape index: {}]   ;;  %s551_s3 = inlined_call_operand.vmem [shape: f32[16,8], index: 3, kind: output, shape index: {}]  }
   0x1   :  { %s16_s13 = sshll.u32 %s470_s12, 4  ;;  %s446_s16 = scalar_lea.hbm %s549_s1, 3072  ;;  %s17_s13 = int_to_ptr.vmem [resolvable:$true] %s16_s13 }
   0x2   :  { %p447_p0 = scmp.ne.s32.totalorder %s549_s1, %s446_s16  ;;  %p450_p1 = scmp.lt.u32.totalorder %s446_s16, %s549_s1 }
   0x4   :  { %p452_p2 = pnand %p450_p1, %p447_p0 }
   0x6   :  { %455 = shalt.err (!%p452_p2)
}
   0x7   :  { %s456_s21 = scalar_lea.vmem %s17_s13, 3072  ;;  %p461_p4 = scmp.lt.s32.totalorder %s17_s13, %s17_s13 }
   0x8   :  { %p457_p3 = scmp.ne.s32.totalorder %s17_s13, %s456_s21  ;;  %p462_p5 = scmp.lt.s32.totalorder %s456_s21, %s456_s21 }
   0xa   :  { %p463_p6 = por %p462_p5, %p461_p4 }
   0xc   :  { %p464_p7 = pnand %p463_p6, %p457_p3 }
   0xe   :  { %467 = shalt.err (!%p464_p7)
}
   0xf   :  { %s471_s22 = smov 64   ;;  %s472_s23 = smov 4  }
  0x10   :  { %22 = dma.hbm_to_vmem [thread:$0]  %s549_s1, 3072, %s17_s13, [#allocation3], %s471_s22, %s471_s22, %s472_s23  }
  0x11   :  { %468 = dma.done.wait [#allocation3], 3072  }
  0x12   :  { %469 = vsyncadd [#allocation3], 4294964224  ;;  %v473_v0 = vmov 0.0   ;;  %vm474_vm0 = vmmov 0   ;;  %vm48_vm1 = vcmask 1041408   ;;  %v429_v3 = vld [vmem:[%s548_s0] sm:$0xff]  }
  0x13   :  { %378 = vmatprep.subr.bf16.mxu0 %v473_v0  ;;  %380 = vmatprep.mubr.msk.bf16.mxu0 %vm474_vm0, %v473_v0  ;;  %v31_v1 = vld [vmem:[#allocation2] sm:$0xf]  ;;  %vm44_vm2 = vcmask 31744   ;;  %v431_v5 = vld [vmem:[#allocation2 + $0x48] sm:$0xff]   ;;  %v432_v6 = vld [vmem:[#allocation2 + $0x50] sm:$0xff]   ;;  %vm327_vm3 = vcmask 64512  }
  0x14   :  { %384 = vmatprep.subr.bf16.mxu1 %v473_v0  ;;  %400 = vmatprep.mubr.msk.bf16.mxu1 %vm474_vm0, %v473_v0  ;;  %v50_v2 = vsel %vm48_vm1, %v31_v1, 0  ;;  %v430_v4 = vld [vmem:[#allocation2 + $0x40] sm:$0xff]   ;;  %v433_v7 = vld [vmem:[#allocation2 + $0x58] sm:$0xff]   ;;  %v435_v9 = vld [vmem:[#allocation2 + $0x68] sm:$0xff]  }
  0x15   :  { %379 = vmatpush3.bf16.msra.mxu0 %v50_v2  ;;  %385 = vmatpush3.bf16.msra.mxu1 %v430_v4  ;;  %v434_v8 = vld [vmem:[#allocation2 + $0x60] sm:$0xff]   ;;  %v436_v10 = vld [vmem:[#allocation2 + $0x70] sm:$0xff]   ;;  %v437_v11 = vld [vmem:[#allocation2 + $0x78] sm:$0xff]  }
  0x16   :  { %404 = vmatprep.subr.bf16.mxu0 %v473_v0  ;;  %386 = vmatprep.subr.bf16.mxu1 %v473_v0  ;;  %v438_v12 = vld [vmem:[#allocation2 + $0x80] sm:$0xff]   ;;  %v439_v13 = vld [vmem:[#allocation2 + $0x88] sm:$0xff]   ;;  %v440_v14 = vld [vmem:[#allocation2 + $0x90] sm:$0xff]  }
  0x17   :  { %v441_v15 = vld [vmem:[#allocation2 + $0x98] sm:$0xff]   ;;  %v442_v16 = vld [vmem:[#allocation2 + $0xa0] sm:$0xff]   ;;  %v443_v17 = vld [vmem:[#allocation2 + $0xa8] sm:$0xff]  }
  0x18   :  { %381 = vmatmul.mubr.msk.bf16.vlgmr.msra.gmra.mrb[0].mxu0 %vm44_vm2, %v429_v3  ;;  %v335_v18 = vld [vmem:[%s550_s2] ss:$0 sm:$0xff]  ;;  %v444_v28 = vld [vmem:[#allocation2 + $0xb0] sm:$0xff]   ;;  %v445_v29 = vld [vmem:[#allocation2 + $0xb8] sm:$0xff]  }
  0x19   :  { %420 = vmatprep.mubr.msk.bf16.mxu0 %vm474_vm0, %v473_v0  ;;  %387 = vmatpush3.bf16.msra.mxu1 %v431_v5  ;;  %v339_v30 = vld [vmem:[%s550_s2 + $0x1] ss:$0 sm:$0xff]  ;;  %v349_v40 = vld [vmem:[%s550_s2 + $0x2] ss:$0 sm:$0xff] }
  0x1a   :  { %388 = vmatprep.subr.bf16.mxu1 %v473_v0  ;;  %405 = vmatpush3.bf16.msra.mxu0 %v438_v12 }
  0x1b   :  { %406 = vmatprep.subr.bf16.mxu0 %v473_v0 }
  0x1d   :  { %389 = vmatpush3.bf16.msra.mxu1 %v432_v6 }
  0x1e   :  { %390 = vmatprep.subr.bf16.mxu1 %v473_v0  ;;  %407 = vmatpush3.bf16.msra.mxu0 %v439_v13 }
  0x1f   :  { %408 = vmatprep.subr.bf16.mxu0 %v473_v0 }
  0x21   :  { %391 = vmatpush3.bf16.msra.mxu1 %v433_v7 }
  0x22   :  { %392 = vmatprep.subr.bf16.mxu1 %v473_v0  ;;  %409 = vmatpush3.bf16.msra.mxu0 %v440_v14 }
  0x23   :  { %410 = vmatprep.subr.bf16.mxu0 %v473_v0 }
  0x25   :  { %393 = vmatpush3.bf16.msra.mxu1 %v434_v8 }
  0x26   :  { %394 = vmatprep.subr.bf16.mxu1 %v473_v0  ;;  %411 = vmatpush3.bf16.msra.mxu0 %v441_v15 }
  0x27   :  { %412 = vmatprep.subr.bf16.mxu0 %v473_v0 }
  0x29   :  { %395 = vmatpush3.bf16.msra.mxu1 %v435_v9 }
  0x2a   :  { %396 = vmatprep.subr.bf16.mxu1 %v473_v0  ;;  %413 = vmatpush3.bf16.msra.mxu0 %v442_v16 }
  0x2b   :  { %414 = vmatprep.subr.bf16.mxu0 %v473_v0 }
  0x2d   :  { %397 = vmatpush3.bf16.msra.mxu1 %v436_v10 }
  0x2e   :  { %398 = vmatprep.subr.bf16.mxu1 %v473_v0  ;;  %415 = vmatpush3.bf16.msra.mxu0 %v443_v17 }
  0x2f   :  { %416 = vmatprep.subr.bf16.mxu0 %v473_v0 }
  0x31   :  { %399 = vmatpush3.bf16.msra.mxu1 %v437_v11 }
  0x32   :  { %417 = vmatpush3.bf16.msra.mxu0 %v444_v28 }
  0x33   :  { %418 = vmatprep.subr.bf16.mxu0 %v473_v0 }
  0x36   :  { %419 = vmatpush3.bf16.msra.mxu0 %v445_v29 }
  0xeb   :  { %v86_v19 = vpop.f32.mrb[0].mxu0 }
  0xec   :  { %v87_v20 = vadd.f32 %v335_v18, %v86_v19  ;;  %v382_v21 = vpop.f32.mrb[1].mxu0 }
  0xed   :  { %v89_v22 = vpop.f32.mrb[2].mxu0 }
  0xee   :  { %v90_v23 = vadd.f32 %v335_v18, %v89_v22  ;;  %v383_v24 = vpop.f32.mrb[3].mxu0  ;;  %v93_v25 = vmax.f32 %v87_v20, 0.0 }
  0xf0   :  { %v94_v26 = vmax.f32 %v90_v23, 0.0 }
  0xf2   :  { %v95_v27 = vpack.c.bf16 %v94_v26, %v93_v25 }
  0xf4   :  { %401 = vmatmul.mubr.bf16.vlgmr.msra.gmra.mrb[0].mxu1 %v95_v27 }
 0x1c7   :  { %v203_v31 = vpop.f32.mrb[0].mxu1 }
 0x1c8   :  { %v204_v32 = vadd.f32 %v339_v30, %v203_v31  ;;  %v402_v33 = vpop.f32.mrb[1].mxu1 }
 0x1c9   :  { %v206_v34 = vpop.f32.mrb[2].mxu1 }
 0x1ca   :  { %v207_v35 = vadd.f32 %v339_v30, %v206_v34  ;;  %v403_v36 = vpop.f32.mrb[3].mxu1  ;;  %v210_v37 = vmax.f32 %v204_v32, 0.0 }
 0x1cc   :  { %v211_v38 = vmax.f32 %v207_v35, 0.0 }
 0x1ce   :  { %v212_v39 = vpack.c.bf16 %v211_v38, %v210_v37 }
 0x1d0   :  { %421 = vmatmul.mubr.bf16.vlgmr.msra.gmra.mrb[4].mxu0 %v212_v39 }
 0x2a3   :  { %v320_v41 = vpop.f32.mrb[4].mxu0 }
 0x2a4   :  { %v321_v42 = vadd.f32 %v349_v40, %v320_v41  ;;  %v422_v43 = vpop.f32.mrb[5].mxu0 }
 0x2a5   :  { %v323_v44 = vpop.f32.mrb[6].mxu0 }
 0x2a6   :  { %328 = vst.msk [vmem:[%s551_s3] sm:$0xff] %vm327_vm3, %v321_v42  ;;  %v324_v45 = vadd.f32 %v349_v40, %v323_v44  ;;  %v423_v46 = vpop.f32.mrb[7].mxu0 }
 0x2a8   :  { %329 = vst.msk [vmem:[%s551_s3 + $0x8] sm:$0xff] %vm327_vm3, %v324_v45 }
 0x2a9   :  { %334 = vsyncpa [#allocation3], 1 }

</bundles_post_ra>
